<compile_context>
chip_gen: v7x
topology: tpu7x:2x2x1
jax: 0.10.0
libtpu: 0.0.40
codegen_flags: <defaults>
</compile_context>

<pallas_src>
import math
from functools import partial

import jax
import jax.numpy as jnp
from jax.experimental import pallas as pl
from jax.experimental.pallas import tpu as pltpu


def _round_up(x, m):
    return (x + m - 1) // m * m


def _pick_row_tile(b, rows_cap):
    """Row tile: multiple of 8 (or full extent); prefer >=2 tiles for megacore."""
    cap = max(8, (min(rows_cap, 1024) // 8) * 8)
    if b <= cap:
        if b >= 16 and b % 16 == 0:
            return b // 2            # two row tiles -> both v7x TensorCores get work
        return b                     # full-extent rows are exempt from the 8-rule
    lo = max(8, (cap // 4 // 8) * 8)
    for t in range(cap, lo - 1, -8):
        if b % t == 0:               # 8-multiple divisor of B -> no row padding
            return t
    return cap                       # fallback: pad rows up to a cap multiple


def _make_kernel(tile_n):
    lane_fold = (tile_n % 128 == 0)
    nseg = tile_n // 128

    def kernel(pred_ref, targ_ref, msg_ref, cos_ref, pp_acc, tt_acc, pt_acc):
        j = pl.program_id(1)

        @pl.when(j == 0)
        def _():
            pp_acc[...] = jnp.zeros_like(pp_acc)
            tt_acc[...] = jnp.zeros_like(tt_acc)
            pt_acc[...] = jnp.zeros_like(pt_acc)

        # cast to f32 in-kernel; inputs stay in their original dtype in HBM
        p = pred_ref[...].astype(jnp.float32)
        t = targ_ref[...].astype(jnp.float32)
        pp, tt, pt = p * p, t * t, p * t

        if lane_fold:
            # accumulate 128-lane partial sums with pure VALU adds (128-aligned
            # static lane slices are free); the cross-lane (XLU) reduce is
            # hoisted into the finalize below.
            def fold(x):
                s = x[:, 0:128]
                for k in range(1, nseg):
                    s = s + x[:, k * 128:(k + 1) * 128]
                return s
            pp_acc[...] += fold(pp)
            tt_acc[...] += fold(tt)
            pt_acc[...] += fold(pt)
        else:
            pp_acc[...] += jnp.sum(pp, axis=1, keepdims=True)
            tt_acc[...] += jnp.sum(tt, axis=1, keepdims=True)
            pt_acc[...] += jnp.sum(pt, axis=1, keepdims=True)

        @pl.when(j == pl.num_programs(1) - 1)
        def _():
            sump = jnp.sum(pp_acc[...], axis=1, keepdims=True)
            sumt = jnp.sum(tt_acc[...], axis=1, keepdims=True)
            sumpt = jnp.sum(pt_acc[...], axis=1, keepdims=True)
            rp = jnp.sqrt(sump)
            rt = jnp.sqrt(sumt)
            # rp/rt and rp*rt avoid f32 overflow of sump*sumt for large-norm rows
            msg_ref[...] = rp / rt - 1.0
            cos_ref[...] = sumpt / (rp * rt)

    return kernel


def loss_sg(pred, targ, *, block_bytes=2 << 20):
    """Pallas TPU implementation of loss_SG.forward(pred, targ) for 2-D inputs."""
    assert pred.shape == targ.shape and pred.ndim == 2
    b, n = pred.shape
    itemsize = jnp.dtype(pred.dtype).itemsize

    # --- column axis -------------------------------------------------------
    if n * itemsize * 8 <= block_bytes:
        # whole rows fit the block budget: full-extent last dim (exempt from
        # the 128-divisibility rule) -> single column step, no padding copy.
        tile_n, grid_n = n, 1
        rows_cap = block_bytes // (n * itemsize)
    else:
        pref = 2048 if itemsize >= 4 else 4096
        tile_n = min(_round_up(n, 128), pref,
                     max(128, (block_bytes // (8 * itemsize)) // 128 * 128))
        rows_cap = max(8, block_bytes // (tile_n * itemsize))
        n_pad = _round_up(n, tile_n)
        if n_pad != n:
            # zero column padding does not change the row sums (rare path)
            pred = jnp.pad(pred, ((0, 0), (0, n_pad - n)))
            targ = jnp.pad(targ, ((0, 0), (0, n_pad - n)))
        grid_n = n_pad // tile_n

    # --- row axis ------------------------------------------------------------
    tile_m = _pick_row_tile(b, rows_cap)
    grid_m = -(-b // tile_m)
    b_pad = grid_m * tile_m
    if b_pad != b:
        # padded rows produce garbage/NaN per-row stats; sliced off before the mean
        pred = jnp.pad(pred, ((0, b_pad - b), (0, 0)))
        targ = jnp.pad(targ, ((0, b_pad - b), (0, 0)))

    acc_w = 128 if tile_n % 128 == 0 else 1

    msg, cosv = pl.pallas_call(
        _make_kernel(tile_n),
        out_shape=(jax.ShapeDtypeStruct((b_pad, 1), jnp.float32),
                   jax.ShapeDtypeStruct((b_pad, 1), jnp.float32)),
        grid_spec=pltpu.PrefetchScalarGridSpec(
            num_scalar_prefetch=0,
            grid=(grid_m, grid_n),
            in_specs=[
                pl.BlockSpec((tile_m, tile_n), lambda i, j: (i, j)),
                pl.BlockSpec((tile_m, tile_n), lambda i, j: (i, j)),
            ],
            out_specs=[
                pl.BlockSpec((tile_m, 1), lambda i, j: (i, 0)),
                pl.BlockSpec((tile_m, 1), lambda i, j: (i, 0)),
            ],
            scratch_shapes=[pltpu.VMEM((tile_m, acc_w), jnp.float32)] * 3,
        ),
        compiler_params=pltpu.CompilerParams(
            dimension_semantics=("parallel", "arbitrary")),
        cost_estimate=pl.CostEstimate(
            flops=6 * b * n, transcendentals=0,
            bytes_accessed=2 * b * n * itemsize + 8 * b_pad),
    )(pred, targ)

    msg = msg[:b, 0]
    # clamp: f32 roundoff can push |cos| just past 1 for near-parallel rows
    cosv = jnp.clip(cosv[:b, 0], -1.0, 1.0)
    # TODO(synk): arccos has no guaranteed Mosaic lowering; this O(batch)
    # epilogue (acos + hypot + mean over per-row scalars) stays in plain XLA.
    psg = jnp.arccos(cosv) * (1.0 / math.pi)
    return jnp.mean(jnp.sqrt(msg * msg + psg * psg))


# ---------------------------------------------------------------------------
# pure-JAX reference (mirrors the PyTorch module)
# ---------------------------------------------------------------------------
def loss_sg_ref(pred, targ):
    sump = jnp.sum(pred ** 2, axis=1)
    sumt = jnp.sum(targ ** 2, axis=1)
    sumpt = jnp.sum(pred * targ, axis=1)
    msg = jnp.sqrt(sump / sumt) - 1.0
    psg = jnp.arccos(sumpt / jnp.sqrt(sump * sumt)) / jnp.pi
    return jnp.mean(jnp.sqrt(msg ** 2 + psg ** 2))


if __name__ == "__main__":
    key = jax.random.PRNGKey(0)
    k1, k2, k3, k4, k5, k6 = jax.random.split(key, 6)

    loss_fn = jax.jit(loss_sg)

    # lane/sublane-aligned f32
    pa = jax.random.normal(k1, (8, 256), jnp.float32)
    ta = jax.random.normal(k2, (8, 256), jnp.float32)
    oa = jax.block_until_ready(loss_fn(pa, ta))
    ra = loss_sg_ref(pa, ta)
    assert oa.shape == () and bool(jnp.isfinite(oa))
    assert bool(jnp.allclose(oa, ra, rtol=1e-4, atol=1e-5)), (oa, ra)

    # unaligned f32 (full-extent blocks, no padding copies)
    pb = jax.random.normal(k3, (5, 200), jnp.float32)
    tb = jax.random.normal(k4, (5, 200), jnp.float32)
    ob = jax.block_until_ready(loss_fn(pb, tb))
    rb = loss_sg_ref(pb, tb)
    assert bool(jnp.isfinite(ob))
    assert bool(jnp.allclose(ob, rb, rtol=1e-4, atol=1e-5)), (ob, rb)

    # bf16 inputs: f32 cast happens inside the kernel; 2 row tiles (megacore)
    pc = jax.random.normal(k5, (16, 384), jnp.float32).astype(jnp.bfloat16)
    tc = jax.random.normal(k6, (16, 384), jnp.float32).astype(jnp.bfloat16)
    oc = jax.block_until_ready(loss_fn(pc, tc))
    rc = loss_sg_ref(pc.astype(jnp.float32), tc.astype(jnp.float32))
    assert bool(jnp.isfinite(oc))
    assert bool(jnp.allclose(oc, rc, rtol=5e-3, atol=1e-4)), (oc, rc)

    # force the column-tiled accumulator path with a tiny block budget
    loss_small_blk = jax.jit(partial(loss_sg, block_bytes=4096))
    pd = jax.random.normal(k1, (16, 512), jnp.float32)
    td = jax.random.normal(k2, (16, 512), jnp.float32)
    od = jax.block_until_ready(loss_small_blk(pd, td))
    rd = loss_sg_ref(pd, td)
    assert bool(jnp.isfinite(od))
    assert bool(jnp.allclose(od, rd, rtol=1e-4, atol=1e-5)), (od, rd)

    print("KERNEL_OK")
</pallas_src>

<mosaic_0001>
module attributes {stable_mosaic.version = 11 : i64} {
  func.func @kernel(%arg0: i32, %arg1: i32, %arg2: memref<8x256xf32, #tpu.memory_space<vmem>>, %arg3: memref<8x256xf32, #tpu.memory_space<vmem>>, %arg4: memref<8x1xf32, #tpu.memory_space<vmem>>, %arg5: memref<8x1xf32, #tpu.memory_space<vmem>>, %arg6: memref<8x128xf32, #tpu.memory_space<vmem>>, %arg7: memref<8x128xf32, #tpu.memory_space<vmem>>, %arg8: memref<8x128xf32, #tpu.memory_space<vmem>>) attributes {dimension_semantics = [#tpu.dimension_semantics<parallel>, #tpu.dimension_semantics<arbitrary>], iteration_bounds = array<i64: 1, 1>, scalar_prefetch = 0 : i64, scratch_operands = 3 : i64, tpu.core_type = #tpu.core_type<tc>, window_params = [{transform_indices = @transform_0, window_bounds = array<i64: 8, 256>}, {transform_indices = @transform_1, window_bounds = array<i64: 8, 256>}, {transform_indices = @transform_2, window_bounds = array<i64: 8, 1>}, {transform_indices = @transform_3, window_bounds = array<i64: 8, 1>}]} {
    %c0_i32 = arith.constant 0 : i32
    %0 = arith.cmpi eq, %arg1, %c0_i32 : i32
    %1 = arith.extui %0 : i1 to i32
    %c0_i32_0 = arith.constant 0 : i32
    %2 = arith.cmpi ne, %1, %c0_i32_0 : i32
    scf.if %2 {
      %cst = arith.constant 0.000000e+00 : f32
      %29 = vector.broadcast %cst : f32 to vector<8x128xf32>
      %c0_18 = arith.constant 0 : index
      %c0_19 = arith.constant 0 : index
      %30 = vector.load %arg6[%c0_18, %c0_19] : memref<8x128xf32, #tpu.memory_space<vmem>>, vector<8x128xf32>
      tpu.vector_store %arg6[%c0_18, %c0_19], %29 {strides = array<i32>} : memref<8x128xf32, #tpu.memory_space<vmem>>, vector<8x128xf32>,
      %cst_20 = arith.constant 0.000000e+00 : f32
      %31 = vector.broadcast %cst_20 : f32 to vector<8x128xf32>
      %c0_21 = arith.constant 0 : index
      %c0_22 = arith.constant 0 : index
      %32 = vector.load %arg7[%c0_21, %c0_22] : memref<8x128xf32, #tpu.memory_space<vmem>>, vector<8x128xf32>
      tpu.vector_store %arg7[%c0_21, %c0_22], %31 {strides = array<i32>} : memref<8x128xf32, #tpu.memory_space<vmem>>, vector<8x128xf32>,
      %cst_23 = arith.constant 0.000000e+00 : f32
      %33 = vector.broadcast %cst_23 : f32 to vector<8x128xf32>
      %c0_24 = arith.constant 0 : index
      %c0_25 = arith.constant 0 : index
      %34 = vector.load %arg8[%c0_24, %c0_25] : memref<8x128xf32, #tpu.memory_space<vmem>>, vector<8x128xf32>
      tpu.vector_store %arg8[%c0_24, %c0_25], %33 {strides = array<i32>} : memref<8x128xf32, #tpu.memory_space<vmem>>, vector<8x128xf32>,
    } else {
    }
    %c0 = arith.constant 0 : index
    %c0_1 = arith.constant 0 : index
    %3 = vector.load %arg2[%c0, %c0_1] : memref<8x256xf32, #tpu.memory_space<vmem>>, vector<8x256xf32>
    %c0_2 = arith.constant 0 : index
    %c0_3 = arith.constant 0 : index
    %4 = vector.load %arg3[%c0_2, %c0_3] : memref<8x256xf32, #tpu.memory_space<vmem>>, vector<8x256xf32>
    %5 = arith.mulf %3, %3 : vector<8x256xf32>
    %6 = arith.mulf %4, %4 : vector<8x256xf32>
    %7 = arith.mulf %3, %4 : vector<8x256xf32>
    %c0_4 = arith.constant 0 : index
    %c0_5 = arith.constant 0 : index
    %8 = vector.load %arg6[%c0_4, %c0_5] : memref<8x128xf32, #tpu.memory_space<vmem>>, vector<8x128xf32>
    %9 = vector.extract_strided_slice %5 {offsets = [0, 0], sizes = [8, 128], strides = [1, 1]} : vector<8x256xf32> to vector<8x128xf32>
    %10 = vector.extract_strided_slice %5 {offsets = [0, 128], sizes = [8, 128], strides = [1, 1]} : vector<8x256xf32> to vector<8x128xf32>
    %11 = arith.addf %9, %10 : vector<8x128xf32>
    %12 = arith.addf %8, %11 : vector<8x128xf32>
    %c0_6 = arith.constant 0 : index
    %c0_7 = arith.constant 0 : index
    %13 = vector.load %arg6[%c0_6, %c0_7] : memref<8x128xf32, #tpu.memory_space<vmem>>, vector<8x128xf32>
    tpu.vector_store %arg6[%c0_6, %c0_7], %12 {strides = array<i32>} : memref<8x128xf32, #tpu.memory_space<vmem>>, vector<8x128xf32>,
    %c0_8 = arith.constant 0 : index
    %c0_9 = arith.constant 0 : index
    %14 = vector.load %arg7[%c0_8, %c0_9] : memref<8x128xf32, #tpu.memory_space<vmem>>, vector<8x128xf32>
    %15 = vector.extract_strided_slice %6 {offsets = [0, 0], sizes = [8, 128], strides = [1, 1]} : vector<8x256xf32> to vector<8x128xf32>
    %16 = vector.extract_strided_slice %6 {offsets = [0, 128], sizes = [8, 128], strides = [1, 1]} : vector<8x256xf32> to vector<8x128xf32>
    %17 = arith.addf %15, %16 : vector<8x128xf32>
    %18 = arith.addf %14, %17 : vector<8x128xf32>
    %c0_10 = arith.constant 0 : index
    %c0_11 = arith.constant 0 : index
    %19 = vector.load %arg7[%c0_10, %c0_11] : memref<8x128xf32, #tpu.memory_space<vmem>>, vector<8x128xf32>
    tpu.vector_store %arg7[%c0_10, %c0_11], %18 {strides = array<i32>} : memref<8x128xf32, #tpu.memory_space<vmem>>, vector<8x128xf32>,
    %c0_12 = arith.constant 0 : index
    %c0_13 = arith.constant 0 : index
    %20 = vector.load %arg8[%c0_12, %c0_13] : memref<8x128xf32, #tpu.memory_space<vmem>>, vector<8x128xf32>
    %21 = vector.extract_strided_slice %7 {offsets = [0, 0], sizes = [8, 128], strides = [1, 1]} : vector<8x256xf32> to vector<8x128xf32>
    %22 = vector.extract_strided_slice %7 {offsets = [0, 128], sizes = [8, 128], strides = [1, 1]} : vector<8x256xf32> to vector<8x128xf32>
    %23 = arith.addf %21, %22 : vector<8x128xf32>
    %24 = arith.addf %20, %23 : vector<8x128xf32>
    %c0_14 = arith.constant 0 : index
    %c0_15 = arith.constant 0 : index
    %25 = vector.load %arg8[%c0_14, %c0_15] : memref<8x128xf32, #tpu.memory_space<vmem>>, vector<8x128xf32>
    tpu.vector_store %arg8[%c0_14, %c0_15], %24 {strides = array<i32>} : memref<8x128xf32, #tpu.memory_space<vmem>>, vector<8x128xf32>,
    %c0_i32_16 = arith.constant 0 : i32
    %26 = arith.cmpi eq, %arg1, %c0_i32_16 : i32
    %27 = arith.extui %26 : i1 to i32
    %c0_i32_17 = arith.constant 0 : i32
    %28 = arith.cmpi ne, %27, %c0_i32_17 : i32
    scf.if %28 {
      %c0_18 = arith.constant 0 : index
      %c0_19 = arith.constant 0 : index
      %29 = vector.load %arg6[%c0_18, %c0_19] : memref<8x128xf32, #tpu.memory_space<vmem>>, vector<8x128xf32>
      %cst = arith.constant dense<0.000000e+00> : vector<8xf32>
      %30 = vector.multi_reduction <add>, %29, %cst [1] : vector<8x128xf32> to vector<8xf32>
      %31 = vector.shape_cast %30 : vector<8xf32> to vector<8x1xf32>
      %c0_20 = arith.constant 0 : index
      %c0_21 = arith.constant 0 : index
      %32 = vector.load %arg7[%c0_20, %c0_21] : memref<8x128xf32, #tpu.memory_space<vmem>>, vector<8x128xf32>
      %cst_22 = arith.constant dense<0.000000e+00> : vector<8xf32>
      %33 = vector.multi_reduction <add>, %32, %cst_22 [1] : vector<8x128xf32> to vector<8xf32>
      %34 = vector.shape_cast %33 : vector<8xf32> to vector<8x1xf32>
      %c0_23 = arith.constant 0 : index
      %c0_24 = arith.constant 0 : index
      %35 = vector.load %arg8[%c0_23, %c0_24] : memref<8x128xf32, #tpu.memory_space<vmem>>, vector<8x128xf32>
      %cst_25 = arith.constant dense<0.000000e+00> : vector<8xf32>
      %36 = vector.multi_reduction <add>, %35, %cst_25 [1] : vector<8x128xf32> to vector<8xf32>
      %37 = vector.shape_cast %36 : vector<8xf32> to vector<8x1xf32>
      %38 = math.sqrt %31 : vector<8x1xf32>
      %39 = math.sqrt %34 : vector<8x1xf32>
      %40 = arith.divf %38, %39 : vector<8x1xf32>
      %cst_26 = arith.constant 1.000000e+00 : f32
      %41 = vector.broadcast %cst_26 : f32 to vector<8x1xf32>
      %42 = arith.subf %40, %41 : vector<8x1xf32>
      %c0_27 = arith.constant 0 : index
      %c0_28 = arith.constant 0 : index
      %43 = vector.load %arg4[%c0_27, %c0_28] : memref<8x1xf32, #tpu.memory_space<vmem>>, vector<8x1xf32>
      tpu.vector_store %arg4[%c0_27, %c0_28], %42 {strides = array<i32>} : memref<8x1xf32, #tpu.memory_space<vmem>>, vector<8x1xf32>,
      %44 = arith.mulf %38, %39 : vector<8x1xf32>
      %45 = arith.divf %37, %44 : vector<8x1xf32>
      %c0_29 = arith.constant 0 : index
      %c0_30 = arith.constant 0 : index
      %46 = vector.load %arg5[%c0_29, %c0_30] : memref<8x1xf32, #tpu.memory_space<vmem>>, vector<8x1xf32>
      tpu.vector_store %arg5[%c0_29, %c0_30], %45 {strides = array<i32>} : memref<8x1xf32, #tpu.memory_space<vmem>>, vector<8x1xf32>,
    } else {
    }
    return
  }
  func.func @transform_0(%arg0: i32, %arg1: i32) -> (i32, i32) {
    %c0_i32 = arith.constant 0 : i32
    return %arg0, %arg1 : i32, i32
  }
  func.func @transform_1(%arg0: i32, %arg1: i32) -> (i32, i32) {
    %c0_i32 = arith.constant 0 : i32
    return %arg0, %arg1 : i32, i32
  }
  func.func @transform_2(%arg0: i32, %arg1: i32) -> (i32, i32) {
    %c0_i32 = arith.constant 0 : i32
    %c0_i32_0 = arith.constant 0 : i32
    return %arg0, %c0_i32 : i32, i32
  }
  func.func @transform_3(%arg0: i32, %arg1: i32) -> (i32, i32) {
    %c0_i32 = arith.constant 0 : i32
    %c0_i32_0 = arith.constant 0 : i32
    return %arg0, %c0_i32 : i32, i32
  }
}

</mosaic_0001>

<bundles_post_ra>
// kernel: loss_sg.1
= control target key start
LH: loop header
LB: loop body
LE: loop exit
PB: predicated region body
PF: predicated region fallthrough
CT: control target
= control target key end

     0   :  { %9 = vsyncpa [#allocation6], 0  ;;  %s222_s0 = inlined_call_operand.hbm [shape: f32[8,256], index: 0, kind: input, shape index: {}]   ;;  %s223_s1 = inlined_call_operand.hbm [shape: f32[8,256], index: 1, kind: input, shape index: {}]   ;;  %s224_s2 = inlined_call_operand.vmem [shape: f32[8,1], index: 2, kind: output, shape index: {0}]   ;;  %s225_s3 = inlined_call_operand.vmem [shape: f32[8,1], index: 3, kind: output, shape index: {1}]  }
   0x1   :  { %10 = vsyncpa [#allocation8], 0  ;;  %s170_s12 = smov [#allocation5]   ;;  %s171_s14 = smov [#allocation7]  }
   0x2   :  { %s17_s13 = sshll.u32 %s170_s12, 4  ;;  %s27_s15 = sshll.u32 %s171_s14, 4  ;;  %s18_s13 = int_to_ptr.vmem [resolvable:$true] %s17_s13  ;;  %s28_s15 = int_to_ptr.vmem [resolvable:$true] %s27_s15 }
   0x3   :  { %s122_s18 = scalar_lea.hbm %s222_s0, 256 }
   0x4   :  { %p123_p0 = scmp.ne.s32.totalorder %s222_s0, %s122_s18  ;;  %p126_p1 = scmp.lt.u32.totalorder %s122_s18, %s222_s0 }
   0x6   :  { %p128_p2 = pnand %p126_p1, %p123_p0 }
   0x8   :  { %131 = shalt.err (!%p128_p2)
}
   0x9   :  { %s132_s23 = scalar_lea.vmem %s18_s13, 256  ;;  %p137_p4 = scmp.lt.s32.totalorder %s18_s13, %s18_s13 }
   0xa   :  { %p133_p3 = scmp.ne.s32.totalorder %s18_s13, %s132_s23  ;;  %p138_p5 = scmp.lt.s32.totalorder %s132_s23, %s132_s23 }
   0xc   :  { %p139_p6 = por %p138_p5, %p137_p4 }
   0xe   :  { %p140_p7 = pnand %p139_p6, %p133_p3 }
  0x10   :  { %143 = shalt.err (!%p140_p7)
}
  0x11   :  { %20 = dma.hbm_to_vmem [thread:$0]  %s222_s0, 256, %s18_s13, [#allocation6]  }
  0x12   :  { %s144_s28 = scalar_lea.hbm %s223_s1, 256 }
  0x13   :  { %p145_p8 = scmp.ne.s32.totalorder %s223_s1, %s144_s28  ;;  %p148_p9 = scmp.lt.u32.totalorder %s144_s28, %s223_s1 }
  0x15   :  { %p150_p10 = pnand %p148_p9, %p145_p8 }
  0x17   :  { %153 = shalt.err (!%p150_p10)
}
  0x18   :  { %s154_s6 = scalar_lea.vmem %s28_s15, 256  ;;  %p159_p12 = scmp.lt.s32.totalorder %s28_s15, %s28_s15 }
  0x19   :  { %p155_p11 = scmp.ne.s32.totalorder %s28_s15, %s154_s6  ;;  %p160_p13 = scmp.lt.s32.totalorder %s154_s6, %s154_s6 }
  0x1b   :  { %p161_p0 = por %p160_p13, %p159_p12 }
  0x1d   :  { %p162_p1 = pnand %p161_p0, %p155_p11 }
  0x1f   :  { %165 = shalt.err (!%p162_p1)
}
  0x20   :  { %30 = dma.hbm_to_vmem [thread:$0]  %s223_s1, 256, %s28_s15, [#allocation8]  }
  0x21   :  { %166 = dma.done.wait [#allocation6], 256  }
  0x22   :  { %167 = vsyncadd [#allocation6], 4294967040 }
  0x23   :  { %168 = dma.done.wait [#allocation8], 256  }
  0x24   :  { %169 = vsyncadd [#allocation8], 4294967040  ;;  %v44_v0 = vld [vmem:[#allocation5] sm:$0xff]  ;;  %v45_v1 = vld [vmem:[#allocation5 + $0x8] sm:$0xff]  ;;  %vm95_vm4 = vcmask 7168  }
  0x25   :  { %v46_v2 = vld [vmem:[#allocation7] sm:$0xff]  ;;  %v48_v3 = vmul.f32 %v44_v0, %v44_v0  ;;  %v49_v4 = vmul.f32 %v45_v1, %v45_v1  ;;  %v47_v5 = vld [vmem:[#allocation7 + $0x8] sm:$0xff] }
  0x26   :  { %v50_v6 = vmul.f32 %v46_v2, %v46_v2  ;;  %v52_v7 = vmul.f32 %v46_v2, %v44_v0  ;;  %v51_v8 = vmul.f32 %v47_v5, %v47_v5  ;;  %v53_v9 = vmul.f32 %v47_v5, %v45_v1 }
  0x27   :  { %v55_v10 = vadd.f32 %v49_v4, %v48_v3 }
  0x28   :  { %v63_v11 = vadd.f32 %v53_v9, %v52_v7  ;;  %v59_v12 = vadd.f32 %v51_v8, %v50_v6 }
  0x29   :  { %70 = vadd.xlane.f32.xlu0 %v55_v10 }
  0x2a   :  { %76 = vadd.xlane.f32.xlu1 %v63_v11 }
  0x2d   :  { %73 = vadd.xlane.f32.xlu0 %v59_v12 }
  0xb6   :  { %v71_v13 = vpop.xlane.xlu0 %70 }
  0xb7   :  { %114 = vrsqrt.f32 %v71_v13  ;;  %vm80_vm0 = vcmp.eq.f32.partialorder %v71_v13, inf  ;;  %v83_v20 = vand.u32 2147483648, %v71_v13  ;;  %vm82_vm2 = vcmp.eq.f32.partialorder %v71_v13, 0.0  ;;  %v77_v27 = vpop.xlane.xlu1 %76 }
  0xba   :  { %v74_v14 = vpop.xlane.xlu0 %73 }
  0xbb   :  { %116 = vrsqrt.f32 %v74_v14  ;;  %vm87_vm1 = vcmp.eq.f32.partialorder %v74_v14, inf  ;;  %v90_v21 = vand.u32 2147483648, %v74_v14  ;;  %vm89_vm3 = vcmp.eq.f32.partialorder %v74_v14, 0.0 }
  0xc1   :  { %v115_v15 = vpop.eup %114 }
  0xc2   :  { %v79_v16 = vmul.f32 %v115_v15, %v71_v13 }
  0xc4   :  { %v81_v18 = vsel %vm80_vm0, %v71_v13, %v79_v16 }
  0xc5   :  { %v117_v17 = vpop.eup %116  ;;  %v84_v23 = vsel %vm82_vm2, %v83_v20, %v81_v18 }
  0xc6   :  { %v86_v19 = vmul.f32 %v117_v17, %v74_v14 }
  0xc8   :  { %v88_v22 = vsel %vm87_vm1, %v74_v14, %v86_v19 }
  0xc9   :  { %v91_v24 = vsel %vm89_vm3, %v90_v21, %v88_v22 }
  0xca   :  { %118 = vrcp.f32 %v91_v24  ;;  %v97_v25 = vmul.f32 %v91_v24, %v84_v23 }
  0xcc   :  { %120 = vrcp.f32 %v97_v25 }
  0xd4   :  { %v119_v26 = vpop.eup %118 }
  0xd5   :  { %v93_v28 = vmul.f32 %v119_v26, %v84_v23 }
  0xd6   :  { %v121_v29 = vpop.eup %120 }
  0xd7   :  { %v111_v30 = vadd.f32 -1.0, %v93_v28  ;;  %v99_v31 = vmul.f32 %v121_v29, %v77_v27 }
  0xd9   :  { %96 = vst.msk [vmem:[%s224_s2] sm:$0xff] %vm95_vm4, %v111_v30  ;;  %100 = vst.msk [vmem:[%s225_s3] sm:$0xff] %vm95_vm4, %v99_v31 }
  0xda   :  { %109 = vsyncpa [#allocation6], 1 }
  0xdb   :  { %110 = vsyncpa [#allocation8], 1 }

</bundles_post_ra>
